<compile_context>
chip_gen: v5e
topology: v5e:2x2
jax: 0.10.0
libtpu: 0.0.40
codegen_flags: <defaults>
</compile_context>

<pallas_src>
import numpy as np
import jax
import jax.numpy as jnp
from jax.experimental import pallas as pl
from jax.experimental.pallas import tpu as pltpu

WINDOW = 200
SUBWINDOW = 40
LOCN_START = float(WINDOW / 2) - float(SUBWINDOW / 2)   # 80.0
LOCN_END = float(WINDOW / 2) + float(SUBWINDOW / 2)     # 120.0

_SELU_ALPHA = 1.6732632423543772
_SELU_SCALE = 1.0507009873554805

_SEG = 256   # lanes per sample segment (needs >= _OFF + 217)
_OFF = 16    # lane of position 0 inside a segment (>= 16 for conv3 left pad)

# pltpu.roll direction (matches jnp.roll on current Mosaic; verified by probe).
_ROLL_LIKE_JNP = True


def _selu(x):
    return _SELU_SCALE * jnp.where(x > 0, x, _SELU_ALPHA * (jnp.exp(x) - 1.0))


# ----------------------- roll-direction probe (tiny kernel) ------------------
def _roll_probe_kernel(x_ref, o_ref):
    o_ref[...] = pltpu.roll(x_ref[...], 1, axis=1)


def _detect_roll_semantics():
    """Sets _ROLL_LIKE_JNP so lane rotations are direction-safe."""
    global _ROLL_LIKE_JNP
    x = jnp.arange(8 * 128, dtype=jnp.float32).reshape(8, 128)
    got = pl.pallas_call(
        _roll_probe_kernel,
        out_shape=jax.ShapeDtypeStruct((8, 128), jnp.float32),
    )(x)
    _ROLL_LIKE_JNP = bool(jnp.array_equal(got, jnp.roll(x, 1, axis=1)))


# --------------------------- fused Pallas kernel ----------------------------
def _mynet_kernel(x_ref,
                  w1_ref, b1_ref, w2_ref, b2_ref, w3_ref, b3_ref,
                  w4_ref, b4_ref, wh1_ref, bh1_ref, wh2_ref, bh2_ref,
                  wh3_ref, bh3_ref,
                  m2_ref, m3_ref, me0_ref, me2_ref,
                  o_ref,
                  stk2, stk3, stk4, stkh):
    n = x_ref.shape[-1]
    f32 = jnp.float32

    def rollL(v, delta):
        """w[:, j] = v[:, (j + delta) mod n] -- lane rotation on the XLU."""
        d = delta % n
        if d == 0:
            return v
        shift = (n - d) if _ROLL_LIKE_JNP else d
        return pltpu.roll(v, shift, axis=1)

    def mm(a, b):
        return jnp.dot(a, b, preferred_element_type=f32)

    x = x_ref[...]                                             # (1, n), zeros in pads
    w1 = w1_ref[...]                                           # (16, 5)

    # ---- c1: Conv1d(1,10,5,pad=4) + MaxPool(2) + SELU  (Cin=1 -> pure VPU) ----
    y = w1[:, 0:1] * rollL(x, -4)
    for k in range(1, 5):
        y = y + w1[:, k:k + 1] * rollL(x, k - 4)               # (16, n)
    a = _selu(jnp.maximum(y, rollL(y, 1)) + b1_ref[...])       # positions @ stride 2

    # ---- c2: Conv1d(10,15,3,pad=2,dil=2) + MaxPool(2) + SELU ------------------
    am = a * m2_ref[...]                                       # zero the pad lanes
    for k in range(3):                                         # taps stacked along K
        stk2[k * 16:(k + 1) * 16, :] = rollL(am, 4 * k - 4)
    y = mm(w2_ref[...], stk2[...])                             # (16, n)
    a = _selu(jnp.maximum(y, rollL(y, 2)) + b2_ref[...])       # positions @ stride 4

    # ---- c3: Conv1d(15,15,3,pad=4,dil=4) + MaxPool(2) + SELU ------------------
    am = a * m3_ref[...]
    for k in range(3):
        stk3[k * 16:(k + 1) * 16, :] = rollL(am, 16 * k - 16)
    y = mm(w3_ref[...], stk3[...])                             # (16, n)
    a3 = _selu(jnp.maximum(y, rollL(y, 4)) + b3_ref[...])      # positions @ stride 8

    # ---- c4: view(B,75,5) + Conv1d(75,30,3,pad=4,dil=4) + SELU ----------------
    # view absorbed into the q-rolls; main tap everywhere, the two edge taps
    # only touch output positions 4 / 0 and are applied with rolled + masked adds.
    for q in range(5):
        stk4[q * 16:(q + 1) * 16, :] = rollL(a3, 40 * q)
    y4 = mm(w4_ref[...], stk4[...])                            # (96, n)
    pre = (y4[0:32]
           + rollL(y4[32:64], -32) * me0_ref[...]
           + rollL(y4[64:96], 32) * me2_ref[...]
           + b4_ref[...])
    a4 = _selu(pre)                                            # (32, n)

    # ---- merged classifier + regressor heads (flatten absorbed in weights) ----
    for r in range(5):
        stkh[r * 32:(r + 1) * 32, :] = rollL(a4, 8 * r)
    h = _selu(mm(wh1_ref[...], stkh[...]) + bh1_ref[...])      # (100, n)
    h = _selu(mm(wh2_ref[...], h) + bh2_ref[...])              # (20, n)
    out = mm(wh3_ref[...], h) + bh3_ref[...]                   # (2, n): cls row0, reg row1
    ridx = jax.lax.broadcasted_iota(jnp.int32, out.shape, 0)
    o_ref[...] = jnp.where(ridx == 1, jnp.clip(out, LOCN_START, LOCN_END), out)


# ------------------------------ JAX wrapper ----------------------------------
def _build_masks(tb, seg, off):
    n = tb * seg
    m2 = np.zeros((1, n), np.float32)
    m3 = np.zeros((1, n), np.float32)
    me0 = np.zeros((1, n), np.float32)
    me2 = np.zeros((1, n), np.float32)
    for b in range(tb):
        base = b * seg + off
        m2[0, base + 2 * np.arange(102)] = 1.0    # valid conv2 input positions
        m3[0, base + 4 * np.arange(51)] = 1.0     # valid conv3 input positions
        me0[0, base + 32] = 1.0                   # c4 output position 4
        me2[0, base] = 1.0                        # c4 output position 0
    return (jnp.asarray(m2), jnp.asarray(m3), jnp.asarray(me0), jnp.asarray(me2))


def mynet_forward(x, params, *, batch_tile=None):
    """x: (B, 1, WINDOW) float32; params: dict from prepare_params()."""
    B = x.shape[0]
    x2d = x.reshape(B, WINDOW).astype(jnp.float32)
    tb = B if batch_tile is None else batch_tile   # set tb < B to use both v7x cores
    assert B % tb == 0
    grid = (B // tb,)
    nc = tb * _SEG

    # one 256-lane segment per sample; sample data at lanes [b*SEG+OFF, +200)
    xbuf = jnp.pad(x2d, ((0, 0), (_OFF, _SEG - _OFF - WINDOW))).reshape(1, B * _SEG)
    m2, m3, me0, me2 = _build_masks(tb, _SEG, _OFF)

    w = params
    ws = [w["W1"], w["b1"], w["W2"], w["b2"], w["W3"], w["b3"], w["W4"], w["b4"],
          w["WH1"], w["bH1"], w["WH2"], w["bH2"], w["WH3"], w["bH3"]]

    def rep(a):
        return pl.BlockSpec(a.shape, lambda i: (0, 0))

    in_specs = ([pl.BlockSpec((1, nc), lambda i: (0, i))]
                + [rep(a) for a in ws]
                + [rep(m) for m in (m2, m3, me0, me2)])

    yfull = pl.pallas_call(
        _mynet_kernel,
        out_shape=jax.ShapeDtypeStruct((2, B * _SEG), jnp.float32),
        grid=grid,
        in_specs=in_specs,
        out_specs=pl.BlockSpec((2, nc), lambda i: (0, i)),
        scratch_shapes=[
            pltpu.VMEM((48, nc), jnp.float32),    # conv2 tap stack (3 x 16)
            pltpu.VMEM((48, nc), jnp.float32),    # conv3 tap stack (3 x 16)
            pltpu.VMEM((80, nc), jnp.float32),    # c4 group stack   (5 x 16)
            pltpu.VMEM((160, nc), jnp.float32),   # head feature stack (5 x 32)
        ],
        compiler_params=pltpu.CompilerParams(dimension_semantics=("parallel",)),
    )(xbuf, *ws, m2, m3, me0, me2)

    y = yfull.reshape(2, B, _SEG)[:, :, _OFF]     # (2, B): row0 classifier, row1 regressor
    return jnp.squeeze(y.T)


# -------------------- one-time parameter rearrangement -----------------------
def prepare_params(p):
    """Torch-layout params -> shared (batch-independent) tap-stacked matrices.
    Channel dims are padded to multiples of 8 with zero rows/cols."""
    f = lambda a: np.asarray(a, np.float32)
    w1, w2, w3, w4 = f(p["w1"]), f(p["w2"]), f(p["w3"]), f(p["w4"])

    W1 = np.zeros((16, 5), np.float32)
    W1[:10, :] = w1[:, 0, :]
    b1 = np.zeros((16, 1), np.float32); b1[:10, 0] = f(p["b1"])

    W2 = np.zeros((16, 48), np.float32)
    for k in range(3):
        W2[:15, k * 16:k * 16 + 10] = w2[:, :, k]
    b2 = np.zeros((16, 1), np.float32); b2[:15, 0] = f(p["b2"])

    W3 = np.zeros((16, 48), np.float32)
    for k in range(3):
        W3[:15, k * 16:k * 16 + 15] = w3[:, :, k]
    b3 = np.zeros((16, 1), np.float32); b3[:15, 0] = f(p["b3"])

    # c4 input channel (c, q) -> stacked row q*16 + c ; w4[co, c*5+q, k]
    W4 = np.zeros((96, 80), np.float32)
    for q in range(5):
        for c in range(15):
            W4[0:30, q * 16 + c] = w4[:, c * 5 + q, 1]    # main tap
            W4[32:62, q * 16 + c] = w4[:, c * 5 + q, 0]   # -> output position 4
            W4[64:94, q * 16 + c] = w4[:, c * 5 + q, 2]   # -> output position 0
    b4 = np.zeros((32, 1), np.float32); b4[:30, 0] = f(p["b4"])

    # heads: feature co*5+r -> stacked row r*32 + co
    WA = np.concatenate([f(p["cw1"]), f(p["rw1"])], axis=0)   # (100, 150)
    WH1 = np.zeros((100, 160), np.float32)
    for r in range(5):
        WH1[:, r * 32:r * 32 + 30] = WA[:, r::5]
    bH1 = np.concatenate([f(p["cb1"]), f(p["rb1"])]).reshape(100, 1)

    WH2 = np.zeros((20, 100), np.float32)
    WH2[0:10, 0:50] = f(p["cw2"]); WH2[10:20, 50:100] = f(p["rw2"])
    bH2 = np.concatenate([f(p["cb2"]), f(p["rb2"])]).reshape(20, 1)

    WH3 = np.zeros((2, 20), np.float32)
    WH3[0, 0:10] = f(p["cw3"])[0]; WH3[1, 10:20] = f(p["rw3"])[0]
    bH3 = np.concatenate([f(p["cb3"]), f(p["rb3"])]).reshape(2, 1)

    keys = ["W1", "b1", "W2", "b2", "W3", "b3", "W4", "b4",
            "WH1", "bH1", "WH2", "bH2", "WH3", "bH3"]
    vals = [W1, b1, W2, b2, W3, b3, W4, b4, WH1, bH1, WH2, bH2, WH3, bH3]
    return {k: jnp.asarray(v) for k, v in zip(keys, vals)}


# ------------------------- pure-JAX reference forward ------------------------
def ref_forward(x, p):
    prec = jax.lax.Precision.HIGHEST

    def conv1d(h, w, b, pad, dil):
        y = jax.lax.conv_general_dilated(
            h, w, window_strides=(1,), padding=[(pad, pad)],
            rhs_dilation=(dil,), dimension_numbers=("NCH", "OIH", "NCH"),
            precision=prec)
        return y + b[None, :, None]

    def pool2(h):
        Lp = h.shape[-1] // 2
        return jnp.maximum(h[:, :, 0:2 * Lp:2], h[:, :, 1:2 * Lp:2])

    h = _selu(pool2(conv1d(x, p["w1"], p["b1"], 4, 1)))
    h = _selu(pool2(conv1d(h, p["w2"], p["b2"], 2, 2)))
    h = _selu(pool2(conv1d(h, p["w3"], p["b3"], 4, 4)))
    B = h.shape[0]
    h = h.reshape(B, -1, h.shape[-1] // 5)
    h = _selu(conv1d(h, p["w4"], p["b4"], 4, 4))
    h = h.reshape(B, -1)

    def mlp(z, w1, b1, w2, b2, w3, b3):
        z = _selu(jnp.dot(z, w1.T, precision=prec) + b1)
        z = _selu(jnp.dot(z, w2.T, precision=prec) + b2)
        return jnp.dot(z, w3.T, precision=prec) + b3

    x1 = mlp(h, p["cw1"], p["cb1"], p["cw2"], p["cb2"], p["cw3"], p["cb3"])
    x2 = mlp(h, p["rw1"], p["rb1"], p["rw2"], p["rb2"], p["rw3"], p["rb3"])
    x2 = jnp.clip(x2, LOCN_START, LOCN_END)
    return jnp.squeeze(jnp.concatenate([x1, x2], axis=1))


# ------------------------------- param init ----------------------------------
def init_params(key):
    ks = jax.random.split(key, 20)

    def conv_w(k, cout, cin, ksz):
        std = (1.0 / (cin * ksz)) ** 0.5
        return std * jax.random.normal(k, (cout, cin, ksz), jnp.float32)

    def conv_b(k, cout, fan_in):
        bound = 1.0 / (fan_in ** 0.5)
        return jax.random.uniform(k, (cout,), jnp.float32, -bound, bound)

    def lin_w(k, out_f, in_f):
        std = (1.0 / in_f) ** 0.5
        return std * jax.random.normal(k, (out_f, in_f), jnp.float32)

    def lin_b(k, out_f, in_f):
        bound = 1.0 / (in_f ** 0.5)
        return jax.random.uniform(k, (out_f,), jnp.float32, -bound, bound)

    p = {}
    p["w1"], p["b1"] = conv_w(ks[0], 10, 1, 5), conv_b(ks[1], 10, 5)
    p["w2"], p["b2"] = conv_w(ks[2], 15, 10, 3), conv_b(ks[3], 15, 30)
    p["w3"], p["b3"] = conv_w(ks[4], 15, 15, 3), conv_b(ks[5], 15, 45)
    p["w4"], p["b4"] = conv_w(ks[6], 30, 75, 3), conv_b(ks[7], 30, 225)
    p["cw1"], p["cb1"] = lin_w(ks[8], 50, 150), lin_b(ks[9], 50, 150)
    p["cw2"], p["cb2"] = lin_w(ks[10], 10, 50), lin_b(ks[11], 10, 50)
    p["cw3"], p["cb3"] = lin_w(ks[12], 1, 10), lin_b(ks[13], 1, 10)
    p["rw1"], p["rb1"] = lin_w(ks[14], 50, 150), lin_b(ks[15], 50, 150)
    p["rw2"], p["rb2"] = lin_w(ks[16], 10, 50), lin_b(ks[17], 10, 50)
    p["rw3"], p["rb3"] = lin_w(ks[18], 1, 10), lin_b(ks[19], 1, 10)
    return p


if __name__ == "__main__":
    key = jax.random.PRNGKey(0)
    kparam, kdata = jax.random.split(key)
    params_torch_layout = init_params(kparam)

    B = 2
    x = jax.random.normal(kdata, (B, 1, WINDOW), jnp.float32)

    _detect_roll_semantics()                      # pin lane-rotation direction
    prep = prepare_params(params_torch_layout)

    fwd = jax.jit(mynet_forward)
    y = fwd(x, prep)
    jax.block_until_ready(y)

    y_ref = jax.jit(ref_forward)(x, params_torch_layout)
    jax.block_until_ready(y_ref)

    assert y.shape == (B, 2), y.shape
    assert bool(jnp.all(jnp.isfinite(y)))
    assert bool(jnp.all(y[:, 1] >= LOCN_START)) and bool(jnp.all(y[:, 1] <= LOCN_END))
    np.testing.assert_allclose(np.asarray(y), np.asarray(y_ref), rtol=1e-3, atol=1e-3)
    print("KERNEL_OK")
</pallas_src>

<mosaic_0001>
module attributes {stable_mosaic.version = 11 : i64} {
  func.func @_roll_probe_kernel(%arg0: memref<8x128xf32, #tpu.memory_space<vmem>>, %arg1: memref<8x128xf32, #tpu.memory_space<vmem>>) attributes {dimension_semantics = [], scalar_prefetch = 0 : i64, scratch_operands = 0 : i64, tpu.core_type = #tpu.core_type<tc>} {
    %c0 = arith.constant 0 : index
    %c0_0 = arith.constant 0 : index
    %0 = vector.load %arg0[%c0, %c0_0] : memref<8x128xf32, #tpu.memory_space<vmem>>, vector<8x128xf32>
    %c1_i32 = arith.constant 1 : i32
    %1 = tpu.dynamic_rotate %0 by %c1_i32 dim 1 : vector<8x128xf32>, i32 -> vector<8x128xf32>
    %c0_1 = arith.constant 0 : index
    %c0_2 = arith.constant 0 : index
    %2 = vector.load %arg1[%c0_1, %c0_2] : memref<8x128xf32, #tpu.memory_space<vmem>>, vector<8x128xf32>
    tpu.vector_store %arg1[%c0_1, %c0_2], %1 {strides = array<i32>} : memref<8x128xf32, #tpu.memory_space<vmem>>, vector<8x128xf32>,
    return
  }
}

</mosaic_0001>

<bundles_post_ra>
// kernel: tpu_custom_call.1
= control target key start
LH: loop header
LB: loop body
LE: loop exit
PB: predicated region body
PF: predicated region fallthrough
CT: control target
= control target key end

     0   :  { %6 = vsyncpa [#allocation3], 0  ;;  %s118_s0 = inlined_call_operand.hbm [shape: f32[8,128], index: 0, kind: input, shape index: {}]   ;;  %s119_s1 = inlined_call_operand.hbm [shape: f32[8,128], index: 1, kind: output, shape index: {}]  }
   0x1   :  { %7 = vsyncpa [#allocation4], 0  ;;  %s13_s8 = sshll.u32 %s118_s0, 4  ;;  %s99_s9 = smov [#allocation2]   ;;  %s14_s8 = int_to_ptr.hbm [resolvable:$true] %s13_s8 }
   0x2   :  { %s15_s10 = sshll.u32 %s99_s9, 4  ;;  %s16_s10 = int_to_ptr.vmem [resolvable:$true] %s15_s10 }
   0x3   :  { %18 = dma.hbm_to_vmem [thread:$0]  %s14_s8, 128, %s16_s10, [#allocation3]  }
   0x4   :  { %95 = dma.done.wait [#allocation3], 128  }
   0x5   :  { %96 = vsyncadd [#allocation3], 4294967168  ;;  %v23_v0 = vld [vmem:[#allocation2] sm:$0xff]  ;;  %s100_s11 = smov 1   ;;  %s101_s12 = smov [#allocation5]  }
   0x6   :  { %24 = vrot.lane.b32.xlu0 %v23_v0, %s100_s11  ;;  %s32_s13 = sshll.u32 %s101_s12, 4  ;;  %s34_s16 = sshll.u32 %s119_s1, 4  ;;  %s33_s13 = int_to_ptr.vmem [resolvable:$true] %s32_s13  ;;  %s35_s16 = int_to_ptr.hbm [resolvable:$true] %s34_s16 }
  0x78   :  { %v25_v1 = vpop.permute.xlu0 %24 }
  0x79   :  { %26 = vst [vmem:[#allocation5] sm:$0xff] %v25_v1 }
  0x7a   :  { %37 = dma.vmem_to_hbm [thread:$0]  %s33_s13, 128, %s35_s16, [#allocation4]  }
  0x7b   :  { %97 = dma.done.wait [#allocation4], 128  }
  0x7c   :  { %98 = vsyncadd [#allocation4], 4294967168 }
  0x7d   :  { %42 = vsyncpa [#allocation3], 1 }
  0x7e   :  { %43 = vsyncpa [#allocation4], 1 }

</bundles_post_ra>
